<compile_context>
chip_gen: v6e
topology: v6e:2x2x1
jax: 0.10.0
libtpu: 0.0.40
codegen_flags: <defaults>
</compile_context>

<pallas_src>
import functools

import jax
import jax.numpy as jnp
from jax.experimental import pallas as pl
from jax.experimental.pallas import tpu as pltpu

N_EMBD = 384   # matches the module's n_embd
DROPOUT = 0.2  # kept for reference; eval-mode => identity


# ----------------------------------------------------------------------------- kernel

def _head_kernel(x_ref, w_ref, o_ref, *, seq_len):
    # x_ref: (R, C)      R = Bb * seq_len rows of Bb sequences stacked (f32 or bf16)
    # w_ref: (C, 3*Hp)   bf16, packed [ q*scale | k | v ], each zero-padded to Hp lanes
    # o_ref: (R, Hp)     f32; columns head_size..Hp are zero, wrapper slices them off
    R = x_ref.shape[0]
    Hp = o_ref.shape[1]
    num_seqs = R // seq_len

    # Fused QKV projection: one MXU matmul over all R rows (bf16 in, f32 accumulation).
    x = x_ref[...].astype(jnp.bfloat16)
    qkv = jnp.dot(x, w_ref[...], preferred_element_type=jnp.float32)   # (R, 3*Hp) f32

    # Tile-aligned 128-lane slices; the n_embd**-0.5 scale is already folded into Wq.
    q = qkv[:, 0:Hp].astype(jnp.bfloat16)
    k = qkv[:, Hp:2 * Hp].astype(jnp.bfloat16)
    v = qkv[:, 2 * Hp:3 * Hp].astype(jnp.bfloat16)

    # Scores for all stacked sequences in ONE matmul (contraction depth Hp = 128;
    # the zero-padded head columns contribute nothing). Cross-sequence entries are
    # masked out below together with the causal mask.
    scores = jnp.einsum('qd,kd->qk', q, k,
                        preferred_element_type=jnp.float32)            # (R, R) f32

    # Combined causal + same-sequence (block-diagonal) mask from 2-D iotas.
    r = jax.lax.broadcasted_iota(jnp.int32, (R, R), 0)
    c = jax.lax.broadcasted_iota(jnp.int32, (R, R), 1)
    mask = c <= r
    if num_seqs > 1:
        if seq_len & (seq_len - 1) == 0:          # power-of-two T -> cheap shifts
            sh = seq_len.bit_length() - 1
            mask = mask & ((r >> sh) == (c >> sh))
        else:
            mask = mask & ((r // seq_len) == (c // seq_len))
    scores = jnp.where(mask, scores, -jnp.inf)

    # Numerically stable softmax in f32 (EUP reciprocal for the normalization).
    m = jnp.max(scores, axis=-1, keepdims=True)
    e = jnp.exp(scores - m)
    denom = jnp.sum(e, axis=-1, keepdims=True)
    probs = e * pl.reciprocal(denom, approx=True)

    # TODO(synk): nn.Dropout(0.2) on probs is identity in eval mode; training-mode
    # dropout (with torch-matching RNG) is not reproduced here.

    out = jnp.dot(probs.astype(jnp.bfloat16), v,
                  preferred_element_type=jnp.float32)                  # (R, Hp) f32
    o_ref[...] = out.astype(o_ref.dtype)                               # full-lane stores


# ----------------------------------------------------------------------------- sizing

def _vmem_capacity_bytes():
    """Generation-aware VMEM capacity (v5e/v6e 128 MiB, v7x 64 MiB per TC)."""
    try:
        return int(pltpu.get_tpu_info().vmem_capacity_bytes)
    except Exception:
        return 64 * 1024 * 1024   # conservative fallback (v7x per-TensorCore)


def _per_step_vmem_bytes(R, C, Hp):
    return (2 * 4 * R * C            # double-buffered x tile (f32 worst case)
            + 2 * 2 * C * 3 * Hp     # double-buffered packed weights (bf16)
            + 2 * 4 * R * Hp         # double-buffered output tile (f32)
            + 4 * R * 3 * Hp         # qkv f32 intermediate
            + 3 * 2 * R * Hp         # q/k/v bf16
            + 3 * 4 * R * R          # scores / exp / probs (f32)
            + 2 * 4 * R * R          # iota / mask temporaries
            + 4 * R * Hp)            # f32 attention output before store


def _pick_batch_block(B, T, C, Hp, vmem_budget_bytes):
    """Sequences per grid step.  Capped so (a) the flattened (Bb*T, Bb*T) score matrix
    stays modest (cross-sequence FLOPs are wasted), (b) the grid has >= 2 steps for the
    v7x megacore whenever B >= 2, (c) the working set fits the generation's VMEM, and
    (d) Bb evenly divides B (no mostly-padded last step)."""
    bb = max(1, min(B, max(1, 256 // T), pl.cdiv(B, 2)))
    while bb > 1 and _per_step_vmem_bytes(bb * T, C, Hp) > vmem_budget_bytes:
        bb -= 1
    while B % bb:
        bb -= 1
    return bb


# ----------------------------------------------------------------------------- wrapper

def pack_head_weights(wk, wq, wv):
    """ONE-TIME weight transform (keep out of the per-call path): fold the n_embd**-0.5
    scale into Wq, zero-pad each projection to a 128-lane-aligned span, concatenate to
    a single (C, 3*Hp) bf16 matrix for a fused, tile-aligned QKV matmul."""
    C, H = wq.shape
    Hp = ((H + 127) // 128) * 128
    # NOTE: the scale uses C = n_embd (faithful to the PyTorch source), not head_size.
    scale = jnp.asarray(C, jnp.float32) ** jnp.float32(-0.5)
    pad = ((0, 0), (0, Hp - H))
    w = jnp.concatenate([jnp.pad(wq * scale, pad),
                         jnp.pad(wk, pad),
                         jnp.pad(wv, pad)], axis=1)
    return w.astype(jnp.bfloat16)


@functools.partial(jax.jit, static_argnames=("head_size",))
def head_forward(x, w_qkv, head_size):
    """x: (B, T, C) f32 (or bf16); w_qkv: (C, 3*Hp) bf16 from pack_head_weights.
    Returns (B, T, head_size) f32."""
    B, T, C = x.shape
    Hp = w_qkv.shape[1] // 3

    cap = _vmem_capacity_bytes()
    Bb = _pick_batch_block(B, T, C, Hp, int(cap * 0.6))
    R = Bb * T
    grid = (B // Bb,)

    x2 = x.reshape(B * T, C)          # free reshape; rows of Bb sequences per block

    out = pl.pallas_call(
        functools.partial(_head_kernel, seq_len=T),
        out_shape=jax.ShapeDtypeStruct((B * T, Hp), jnp.float32),
        grid_spec=pltpu.PrefetchScalarGridSpec(
            num_scalar_prefetch=0,
            grid=grid,
            in_specs=[
                pl.BlockSpec((R, C), lambda b: (b, 0)),
                pl.BlockSpec((C, 3 * Hp), lambda b: (0, 0)),
            ],
            out_specs=pl.BlockSpec((R, Hp), lambda b: (b, 0)),
        ),
        compiler_params=pltpu.CompilerParams(
            dimension_semantics=("parallel",),
            vmem_limit_bytes=int(cap * 0.875),
        ),
    )(x2, w_qkv)

    out = out.reshape(B, T, Hp)
    return out if Hp == head_size else out[..., :head_size]


def reference_forward(x, wk, wq, wv):
    """Plain-JAX (f32) reference matching the PyTorch forward in eval mode."""
    B, T, C = x.shape
    k = x @ wk
    q = x @ wq
    v = x @ wv
    w = (q @ jnp.swapaxes(k, -2, -1)) * (C ** -0.5)
    mask = jnp.tril(jnp.ones((T, T), dtype=bool))
    w = jnp.where(mask, w, -jnp.inf)
    w = jax.nn.softmax(w, axis=-1)
    return w @ v


if __name__ == "__main__":
    B, T, C = 4, 32, N_EMBD
    head_size = 64

    key = jax.random.PRNGKey(0)
    kx, kk, kq, kv = jax.random.split(key, 4)

    x = jax.random.normal(kx, (B, T, C), dtype=jnp.float32)
    # Deterministic synthetic parameters for nn.Linear(n_embd, head_size, bias=False),
    # stored as (C, H) so the kernel computes x @ W directly.
    wk = jax.random.normal(kk, (C, head_size), dtype=jnp.float32) * (C ** -0.5)
    wq = jax.random.normal(kq, (C, head_size), dtype=jnp.float32) * (C ** -0.5)
    wv = jax.random.normal(kv, (C, head_size), dtype=jnp.float32) * (C ** -0.5)

    # One-time weight transform (outside the per-call path).
    w_qkv = pack_head_weights(wk, wq, wv)

    out = head_forward(x, w_qkv, head_size)
    out = jax.block_until_ready(out)

    ref = reference_forward(x, wk, wq, wv)
    assert out.shape == (B, T, head_size)
    # bf16 MXU operands (f32 accumulation) + approx reciprocal => compare against the
    # pure-f32 reference with a correspondingly relaxed tolerance.
    assert jnp.allclose(out, ref, atol=5e-2, rtol=5e-2), "mismatch vs reference"

    print("KERNEL_OK")
</pallas_src>

<mosaic_0001>
module attributes {stable_mosaic.version = 11 : i64} {
  func.func @_head_kernel(%arg0: i32, %arg1: memref<64x384xf32, #tpu.memory_space<vmem>>, %arg2: memref<384x384xbf16, #tpu.memory_space<vmem>>, %arg3: memref<64x128xf32, #tpu.memory_space<vmem>>) attributes {dimension_semantics = [#tpu.dimension_semantics<parallel>], iteration_bounds = array<i64: 2>, scalar_prefetch = 0 : i64, scratch_operands = 0 : i64, tpu.core_type = #tpu.core_type<tc>, window_params = [{transform_indices = @transform_0, window_bounds = array<i64: 64, 384>}, {pipeline_mode = #tpu.pipeline_mode<synchronous>, transform_indices = @transform_1, window_bounds = array<i64: 384, 384>}, {transform_indices = @transform_2, window_bounds = array<i64: 64, 128>}]} {
    %c0 = arith.constant 0 : index
    %c0_0 = arith.constant 0 : index
    %0 = vector.load %arg1[%c0, %c0_0] : memref<64x384xf32, #tpu.memory_space<vmem>>, vector<64x384xf32>
    %1 = arith.truncf %0 : vector<64x384xf32> to vector<64x384xbf16>
    %c0_1 = arith.constant 0 : index
    %c0_2 = arith.constant 0 : index
    %2 = vector.load %arg2[%c0_1, %c0_2] : memref<384x384xbf16, #tpu.memory_space<vmem>>, vector<384x384xbf16>
    %cst = arith.constant dense<0.000000e+00> : vector<64x384xf32>
    %3 = tpu.matmul %1, %2, %cst {dimension_numbers = #tpu.dot_dimension_numbers<[1], [0], [0], [1], [0, 0, 1, 1], [], []>} : vector<64x384xbf16>, vector<384x384xbf16>, vector<64x384xf32> -> vector<64x384xf32>
    %4 = vector.extract_strided_slice %3 {offsets = [0, 0], sizes = [64, 128], strides = [1, 1]} : vector<64x384xf32> to vector<64x128xf32>
    %5 = arith.truncf %4 : vector<64x128xf32> to vector<64x128xbf16>
    %6 = vector.extract_strided_slice %3 {offsets = [0, 128], sizes = [64, 128], strides = [1, 1]} : vector<64x384xf32> to vector<64x128xf32>
    %7 = arith.truncf %6 : vector<64x128xf32> to vector<64x128xbf16>
    %8 = vector.extract_strided_slice %3 {offsets = [0, 256], sizes = [64, 128], strides = [1, 1]} : vector<64x384xf32> to vector<64x128xf32>
    %9 = arith.truncf %8 : vector<64x128xf32> to vector<64x128xbf16>
    "tpu.trace_start"() <{level = 10 : i32, message = "qd,kd->qk"}> : () -> ()
    %cst_3 = arith.constant dense<0.000000e+00> : vector<64x64xf32>
    %10 = tpu.matmul %5, %7, %cst_3 {dimension_numbers = #tpu.dot_dimension_numbers<[1], [1], [0], [0], [0, 0, 1, 0], [], []>} : vector<64x128xbf16>, vector<64x128xbf16>, vector<64x64xf32> -> vector<64x64xf32>
    "tpu.trace_stop"() : () -> ()
    %11 = tpu.iota {dimensions = array<i32: 0>} : vector<64x64xi32>
    %12 = tpu.iota {dimensions = array<i32: 1>} : vector<64x64xi32>
    %13 = arith.cmpi sle, %12, %11 : vector<64x64xi32>
    %c5_i32 = arith.constant 5 : i32
    %14 = vector.broadcast %c5_i32 : i32 to vector<64x64xi32>
    %15 = arith.shrsi %11, %14 : vector<64x64xi32>
    %c5_i32_4 = arith.constant 5 : i32
    %16 = vector.broadcast %c5_i32_4 : i32 to vector<64x64xi32>
    %17 = arith.shrsi %12, %16 : vector<64x64xi32>
    %18 = arith.cmpi eq, %15, %17 : vector<64x64xi32>
    %19 = arith.andi %13, %18 : vector<64x64xi1>
    %cst_5 = arith.constant 0xFF800000 : f32
    %20 = vector.broadcast %cst_5 : f32 to vector<64x64xf32>
    %21 = arith.select %19, %10, %20 : vector<64x64xi1>, vector<64x64xf32>
    %cst_6 = arith.constant dense<0xFF800000> : vector<64xf32>
    %22 = vector.multi_reduction <maximumf>, %21, %cst_6 [1] : vector<64x64xf32> to vector<64xf32>
    %23 = vector.shape_cast %22 : vector<64xf32> to vector<64x1xf32>
    %24 = vector.broadcast %23 : vector<64x1xf32> to vector<64x64xf32>
    %25 = arith.subf %21, %24 : vector<64x64xf32>
    %26 = math.exp %25 : vector<64x64xf32>
    %cst_7 = arith.constant dense<0.000000e+00> : vector<64xf32>
    %27 = vector.multi_reduction <add>, %26, %cst_7 [1] : vector<64x64xf32> to vector<64xf32>
    %28 = vector.shape_cast %27 : vector<64xf32> to vector<64x1xf32>
    %29 = tpu.reciprocal %28 {approx = true} : vector<64x1xf32> -> vector<64x1xf32>
    %30 = vector.broadcast %29 : vector<64x1xf32> to vector<64x64xf32>
    %31 = arith.mulf %26, %30 : vector<64x64xf32>
    %32 = arith.truncf %31 : vector<64x64xf32> to vector<64x64xbf16>
    %cst_8 = arith.constant dense<0.000000e+00> : vector<64x128xf32>
    %33 = tpu.matmul %32, %9, %cst_8 {dimension_numbers = #tpu.dot_dimension_numbers<[1], [0], [0], [1], [0, 0, 1, 1], [], []>} : vector<64x64xbf16>, vector<64x128xbf16>, vector<64x128xf32> -> vector<64x128xf32>
    %c0_9 = arith.constant 0 : index
    %c0_10 = arith.constant 0 : index
    %34 = vector.load %arg3[%c0_9, %c0_10] : memref<64x128xf32, #tpu.memory_space<vmem>>, vector<64x128xf32>
    tpu.vector_store %arg3[%c0_9, %c0_10], %33 {strides = array<i32>} : memref<64x128xf32, #tpu.memory_space<vmem>>, vector<64x128xf32>,
    return
  }
  func.func @transform_0(%arg0: i32) -> (i32, i32) {
    %c0_i32 = arith.constant 0 : i32
    %c0_i32_0 = arith.constant 0 : i32
    return %arg0, %c0_i32 : i32, i32
  }
  func.func @transform_1(%arg0: i32) -> (i32, i32) {
    %c0_i32 = arith.constant 0 : i32
    %c0_i32_0 = arith.constant 0 : i32
    %c0_i32_1 = arith.constant 0 : i32
    return %c0_i32, %c0_i32_0 : i32, i32
  }
  func.func @transform_2(%arg0: i32) -> (i32, i32) {
    %c0_i32 = arith.constant 0 : i32
    %c0_i32_0 = arith.constant 0 : i32
    return %arg0, %c0_i32 : i32, i32
  }
}

</mosaic_0001>

<bundles_post_ra>
// kernel: head_forward.1
= control target key start
LH: loop header
LB: loop body
LE: loop exit
PB: predicated region body
PF: predicated region fallthrough
CT: control target
= control target key end

     0   :  { %7 = vsyncpa [#allocation3], 0  ;;  %s2216_s0 = inlined_call_operand.hbm [shape: f32[128,384], index: 0, kind: input, shape index: {}]   ;;  %s2217_s1 = inlined_call_operand.hbm [shape: bf16[384,384], index: 1, kind: input, shape index: {}]   ;;  %s2218_s2 = inlined_call_operand.hbm [shape: f32[128,128], index: 2, kind: output, shape index: {}]  }
   0x1   :  { %9 = vsyncpa [#allocation3 + $0x1], 0 }
   0x2   :  { %10 = vsyncpa [#allocation6], 0 }
   0x3   :  { %11 = vsyncpa [#allocation4], 0 }
   0x4   :  { %13 = vsyncpa [#allocation4 + $0x1], 0  ;;  %s1945_s9 = smov 0   ;;  %s1947_s10 = smov 0  }
   0x5   :  { %s1949_s11 = smov 0   ;;  %s1951_s12 = smov 0  }
   0x6 LB: > { %s1966_s13 = sadd.s32 4294967295, %s1918_s12   ;;  %s1377_s14 = sadd.s32 4294967294, %s1918_s12   ;;  %s1918_s12 = sphi %s1951_s12, %s2240_s12   ;;  %s1914_s11 = sphi %s1949_s11, %s2239_s11   ;;  %s1910_s10 = sphi %s1947_s10, %s2238_s10   ;;  %s1906_s9 = sphi %s1945_s9, %s2237_s9  }
   0x7   : > { %p39_p0 = scmp.ne.s32.totalorder %s1910_s10, %s1906_s9  ;;  %p2219_p1 = scmp.eq.s32.totalorder %s1966_s13, 0 }
   0x8   : > { %p90_p3 = scmp.eq.s32.totalorder %s1377_s14, 1  ;;  %p1378_p5 = scmp.ge.s32.totalorder %s1918_s12, 1 }
   0x9   : > { %p1975_p4 = por %p2219_p1, %p39_p0  ;;  %p97_p7 = scmp.lt.s32.totalorder %s1918_s12, 3 }
   0xa   : > { %p1980_p6 = por %p90_p3, %p39_p0  ;;  %s1920_s18 = smov [#allocation5]  }
   0xb   : > { %s2223_s15 = scalar_select %p1975_p4, 1, 0 }
   0xc   : > { %s2224_s16 = scalar_select %p1980_p6, 1, 0 }
   0xd   : > { %p1985_p8 = pnand %p1378_p5, %p97_p7  ;;  %s109_s19 = sshll.u32 %s1920_s18, 4  ;;  %s110_s19 = int_to_ptr.vmem [resolvable:$true] %s109_s19 }
   0xe   : > { %s1999_s21 = sadd.s32 1, %s1918_s12   ;;  %s26_s22 = sadd.s32 1, %s1914_s11 }
   0xf   : > { %s2225_s17 = scalar_select %p1985_p8, 1, 0 }
  0x10   : > { %p1612_p9 = pneg %p1985_p8  ;;  %s23_s23 = ssub.s32 %s1918_s12, %s1999_s21 }
  0x11   : > { %s1807_s24 = scalar_lea.vmem %s110_s19, 9216  ;;  %p1815_p5 = scmp.lt.s32.totalorder %s110_s19, %s110_s19 }
  0x12   : > { %p1994_p11 = pnand %p1612_p9, %p2219_p1  ;;  %p1808_p13 = scmp.ne.s32.totalorder %s110_s19, %s1807_s24 }
  0x13   : > { %p1816_p7 = scmp.lt.s32.totalorder %s1807_s24, %s1807_s24 }
  0x14   : > { %p1798_p12 = pneg %p1994_p11 }
  0x15   : > { %p1817_p10 = por %p1816_p7, %p1815_p5 }
  0x16   : > { %p1810_p0 = pnand %p1808_p13, %p1798_p12 }
  0x18   : > { %p1811_p3 = pneg %p1810_p0 }
  0x1a   : > { %p1818_p2 = pnand %p1817_p10, %p1811_p3 }
  0x1c   : > { %1821 = shalt.err (!%p1818_p2)
}
  0x1d   : > { %s1921_s25 = smov 192   ;;  %s1922_s26 = smov 12  }
  0x1e   : > { %1615 = dma.hbm_to_vmem [thread:$0]  (!%p1994_p11), %s2217_s1, 9216, %s110_s19, [#allocation6], %s1921_s25, %s1921_s25, %s1922_s26  }
  0x1f   : > { %p24_p9 = scmp.eq.s32.totalorder %s23_s23, 0  ;;  %p33_p12 = scmp.ne.s32.totalorder %s1914_s11, %s1910_s10 }
  0x20   : > { %p34_p10 = scmp.eq.s32.totalorder %s1918_s12, 0  ;;  %p1625_p2 = scmp.lt.s32.totalorder %s1918_s12, 2 }
  0x21   : > { %s2016_s29 = scalar_select %p24_p9, %s1914_s11, %s26_s22  }
  0x22   : > { %p35_p13 = por %p34_p10, %p33_p12  ;;  %p2227_p0 = scmp.eq.s32.totalorder %s1966_s13, 1 }
  0x23   : > { %s123_s3 = sand.u32 1, %s1914_s11   ;;  %s1602_s4 = smul.u32 3072, %s1918_s12 }
  0x24   : > { %p2020_p3 = por %p2227_p0, %p33_p12  ;;  %s1601_s5 = smul.u32 192, %s123_s3 }
  0x25   : > { %s2029_s8 = scalar_lea.hbm %s2216_s0, %s1602_s4  ;;  %p2031_p11 = pnand %p1625_p2, %p35_p13 }
  0x26   : > { %s2228_s30 = scalar_select %p2020_p3, 1, 0 }
  0x27   : > { %s127_s18 = scalar_lea.vmem [#allocation2], %s1601_s5  ;;  %s2037_s20 = scalar_lea.sflag [#allocation3], %s123_s3 }
  0x28   : > { %s135_s19 = sshll.u32 %s127_s18, 4  ;;  %s1822_s22 = scalar_lea.hbm %s2029_s8, 3072  ;;  %s2035_s19 = int_to_ptr.vmem [resolvable:$true] %s135_s19 }
  0x29   : > { %p1823_p5 = scmp.ne.s32.totalorder %s2029_s8, %s1822_s22  ;;  %p1824_p7 = pneg %p2031_p11 }
  0x2a   : > { %s1827_s25 = scalar_lea.hbm %s2216_s0, 6144  ;;  %p1828_p10 = scmp.lt.s32.totalorder %s2029_s8, %s2216_s0 }
  0x2b   : > { %p1825_p9 = pnand %p1824_p7, %p1823_p5  ;;  %p1829_p2 = scmp.lt.s32.totalorder %s1827_s25, %s1822_s22 }
  0x2d   : > { %p1826_p12 = pneg %p1825_p9  ;;  %p1830_p13 = por %p1829_p2, %p1828_p10 }
  0x2f   : > { %p1831_p0 = pnand %p1830_p13, %p1826_p12 }
  0x31   : > { %1834 = shalt.err (!%p1831_p0)
}
  0x32   : > { %s1835_s28 = scalar_lea.vmem %s2035_s19, 3072  ;;  %s1923_s3 = smov [#allocation2]  }
  0x33   : > { %p1836_p1 = scmp.ne.s32.totalorder %s2035_s19, %s1835_s28  ;;  %s1840_s4 = sshll.u32 %s1923_s3, 4  ;;  %s1841_s4 = int_to_ptr.vmem [resolvable:$false] %s1840_s4 }
  0x34   : > { %s1842_s5 = scalar_lea.vmem %s1841_s4, 6144  ;;  %p1843_p9 = scmp.lt.s32.totalorder %s2035_s19, %s1841_s4 }
  0x35   : > { %p1838_p6 = pnand %p1836_p1, %p1824_p7  ;;  %p1844_p3 = scmp.lt.s32.totalorder %s1842_s5, %s1835_s28 }
  0x37   : > { %p1839_p5 = pneg %p1838_p6  ;;  %p1845_p4 = por %p1844_p3, %p1843_p9 }
  0x39   : > { %p1846_p8 = pnand %p1845_p4, %p1839_p5 }
  0x3b   : > { %1849 = shalt.err (!%p1846_p8)
}
  0x3c   : > { %s1924_s6 = smov 384   ;;  %s1925_s7 = smov 24  }
  0x3d   : > { %1619 = dma.hbm_to_vmem [thread:$0]  (!%p2031_p11), %s2029_s8, 3072, %s2035_s19, %s2037_s20, %s1924_s6, %s1924_s6, %s1925_s7  }
  0x3e   : > { %p2230_p1 = scmp.ne.s32.totalorder %s2225_s17, 0 }
  0x3f   : > { %s2061_s18 = sand.u32 (!%p2230_p1), 1, %s1910_s10   ;;  %p2231_p4 = scmp.ne.s32.totalorder (!%p2230_p1), %s2223_s15, 0 }
  0x40   : > { %147 = sbr.rel (%p2230_p1) target bundleno = 1136 (0x470), region = 28  ;;  %s150_s23 = scalar_lea.sflag (!%p2230_p1), [#allocation3], %s2061_s18 }
  0x41   : > { %s1603_s22 = smul.u32 (!%p2230_p1), 192, %s2061_s18 }
  0x43   : > { %s2065_s24 = scalar_lea.vmem (!%p2230_p1), [#allocation2], %s1603_s22 }
  0x45   : > { %1893 = dma.done.wait (%p2231_p4), %s150_s23, 3072  }
  0x46   : > { %1895 = vsyncadd (%p2231_p4), %s150_s23, 4294964224  ;;  %p2232_p6 = scmp.eq.s32.totalorder %s1966_s13, 0 }
  0x48   : > { %1897 = dma.done.wait (%p2232_p6), [#allocation6], 9216   ;;  %p2233_p8 = pmov %p2232_p6 }
  0x49   : > { %v1926_v0 = vmov 0   ;;  %v1668_v1 = vld [vmem:[#allocation5 + $0xac] ss:$12 sps:$4 sm:$0xff]   ;;  %v1670_v2 = vld [vmem:[#allocation5 + $0xa8] ss:$12 sps:$4 sm:$0xff]   ;;  %v185_v35 = vld [vmem:[%s2065_s24 + $0x20] sm:$0xff] }
  0x4a   : > { %1899 = vsyncadd (%p2233_p8), [#allocation6], 4294958080  ;;  %802 = vmatprep.mubr.bf16.mxu1 %v1926_v0  ;;  %697 = vmatprep.subr.bf16.mxu0 %v1668_v1  ;;  %v1671_v3 = vld [vmem:[#allocation5 + $0x94] ss:$12 sps:$4 sm:$0xff]   ;;  %v1673_v4 = vld [vmem:[#allocation5 + $0x90] ss:$12 sps:$4 sm:$0xff]  }
  0x4b   : > { %698 = vmatpush1.bf16.msra.mxu0 %v1670_v2  ;;  %v1674_v5 = vld [vmem:[#allocation5 + $0x7c] ss:$12 sps:$4 sm:$0xff]   ;;  %v1676_v6 = vld [vmem:[#allocation5 + $0x78] ss:$12 sps:$4 sm:$0xff]   ;;  %v1679_v10 = vld [vmem:[#allocation5 + $0x60] ss:$12 sps:$4 sm:$0xff]  }
  0x4c   : > { %699 = vmatprep.subr.bf16.mxu0 %v1671_v3  ;;  %v1677_v7 = vld [vmem:[#allocation5 + $0x64] ss:$12 sps:$4 sm:$0xff]   ;;  %v1689_v8 = vld [vmem:[#allocation5 + $0x22c] ss:$12 sps:$4 sm:$0xff]   ;;  %v1691_v9 = vld [vmem:[#allocation5 + $0x228] ss:$12 sps:$4 sm:$0xff]  }
  0x4d   : > { %v1680_v11 = vld [vmem:[#allocation5 + $0x4c] ss:$12 sps:$4 sm:$0xff]   ;;  %770 = vmatprep.subr.bf16.mxu1 %v1689_v8  ;;  %v1695_v12 = vld [vmem:[#allocation5 + $0x214] ss:$12 sps:$4 sm:$0xff]   ;;  %v1697_v13 = vld [vmem:[#allocation5 + $0x210] ss:$12 sps:$4 sm:$0xff]  }
  0x4e   : > { %771 = vmatpush1.bf16.msra.mxu1 %v1691_v9  ;;  %v1682_v14 = vld [vmem:[#allocation5 + $0x48] ss:$12 sps:$4 sm:$0xff]   ;;  %v1703_v17 = vld [vmem:[#allocation5 + $0x1f8] ss:$12 sps:$4 sm:$0xff]   ;;  %v1685_v19 = vld [vmem:[#allocation5 + $0x30] ss:$12 sps:$4 sm:$0xff]  }
  0x4f   : > { %700 = vmatpush1.bf16.msra.mxu0 %v1673_v4  ;;  %772 = vmatprep.subr.bf16.mxu1 %v1695_v12  ;;  %v1701_v15 = vld [vmem:[#allocation5 + $0x1fc] ss:$12 sps:$4 sm:$0xff]   ;;  %v1683_v16 = vld [vmem:[#allocation5 + $0x34] ss:$12 sps:$4 sm:$0xff]   ;;  %v1707_v18 = vld [vmem:[#allocation5 + $0x1e4] ss:$12 sps:$4 sm:$0xff]  }
  0x50   : > { %701 = vmatprep.subr.bf16.mxu0 %v1674_v5  ;;  %v1686_v20 = vld [vmem:[#allocation5 + $0x1c] ss:$12 sps:$4 sm:$0xff]   ;;  %v1709_v21 = vld [vmem:[#allocation5 + $0x1e0] ss:$12 sps:$4 sm:$0xff]   ;;  %v1688_v23 = vld [vmem:[#allocation5 + $0x18] ss:$12 sps:$4 sm:$0xff]  }
  0x51   : > { %v1713_v22 = vld [vmem:[#allocation5 + $0x1cc] ss:$12 sps:$4 sm:$0xff]   ;;  %v1692_v24 = vld [vmem:[#allocation5 + $0x4] ss:$12 sps:$4 sm:$0xff]   ;;  %v1715_v25 = vld [vmem:[#allocation5 + $0x1c8] ss:$12 sps:$4 sm:$0xff]  }
  0x52   : > { %773 = vmatpush1.bf16.msra.mxu1 %v1697_v13  ;;  %v1719_v26 = vld [vmem:[#allocation5 + $0x1b4] ss:$12 sps:$4 sm:$0xff]   ;;  %v1698_v28 = vld [vmem:[#allocation5 + $0x16c] ss:$12 sps:$4 sm:$0xff]   ;;  %v1721_v29 = vld [vmem:[#allocation5 + $0x1b0] ss:$12 sps:$4 sm:$0xff]  }
  0x53   : > { %702 = vmatpush1.bf16.msra.mxu0 %v1676_v6  ;;  %774 = vmatprep.subr.bf16.mxu1 %v1701_v15  ;;  %v1694_v27 = vld [vmem:[#allocation5] ss:$12 sps:$4 sm:$0xff]   ;;  %v1725_v30 = vld [vmem:[#allocation5 + $0x19c] ss:$12 sps:$4 sm:$0xff]   ;;  %v1727_v34 = vld [vmem:[#allocation5 + $0x198] ss:$12 sps:$4 sm:$0xff]  }
  0x54   : > { %703 = vmatprep.subr.bf16.mxu0 %v1677_v7  ;;  %v1700_v31 = vld [vmem:[#allocation5 + $0x168] ss:$12 sps:$4 sm:$0xff]   ;;  %v1731_v36 = vld [vmem:[#allocation5 + $0x184] ss:$12 sps:$4 sm:$0xff]   ;;  %v1733_v40 = vld [vmem:[#allocation5 + $0x180] ss:$12 sps:$4 sm:$0xff]  }
  0x55   : > { %v1704_v32 = vld [vmem:[#allocation5 + $0x154] ss:$12 sps:$4 sm:$0xff]   ;;  %v182_v33 = vld [vmem:[%s2065_s24 + $0x8] sm:$0xff]  ;;  %v1706_v38 = vld [vmem:[#allocation5 + $0x150] ss:$12 sps:$4 sm:$0xff]   ;;  %vm1102_vm5 = vcmask 523264  }
  0x56   : > { %775 = vmatpush1.bf16.msra.mxu1 %v1703_v17  ;;  %v2078_v37 = vpack.c.bf16 %v185_v35, %v182_v33  ;;  %v1710_v39 = vld [vmem:[#allocation5 + $0x13c] ss:$12 sps:$4 sm:$0xff]   ;;  %v183_v41 = vld [vmem:[%s2065_s24 + $0x10] sm:$0xff]  ;;  %v1712_v43 = vld [vmem:[#allocation5 + $0x138] ss:$12 sps:$4 sm:$0xff]   ;;  %s1386_s15 = sshll.u32 %s2061_s18, 6 }
  0x57   : > { %704 = vmatpush1.bf16.msra.mxu0 %v1679_v10  ;;  %776 = vmatprep.subr.bf16.mxu1 %v1707_v18  ;;  %v186_v42 = vld [vmem:[%s2065_s24 + $0x28] sm:$0xff]  ;;  %v1716_v44 = vld [vmem:[#allocation5 + $0x124] ss:$12 sps:$4 sm:$0xff]   ;;  %v192_v52 = vld [vmem:[%s2065_s24 + $0x58] sm:$0xff]  ;;  %s177_s17 = scalar_lea.vmem [#allocation7], %s1386_s15  ;;  %s1468_s14 = sshll.u32 %s1966_s13, 10 }
  0x58   : > { %705 = vmatprep.subr.bf16.mxu0 %v1680_v11  ;;  %729 = vmatprep.mubr.bf16.mxu0 %v2078_v37  ;;  %v2083_v45 = vpack.c.bf16 %v186_v42, %v183_v41  ;;  %v1740_v46 = vld [vmem:[#allocation5 + $0x170] ss:$12 sps:$4 sm:$0xff]   ;;  %v1718_v47 = vld [vmem:[#allocation5 + $0x120] ss:$12 sps:$4 sm:$0xff]   ;;  %v1742_v50 = vld [vmem:[#allocation5 + $0x158] ss:$12 sps:$4 sm:$0xff]   ;;  %s2173_s25 = scalar_lea.hbm %s2218_s2, %s1468_s14 }
  0x59   : > { %v1741_v48 = vld [vmem:[#allocation5 + $0xb0] ss:$12 sps:$4 sm:$0xff]   ;;  %v1722_v49 = vld [vmem:[#allocation5 + $0x10c] ss:$12 sps:$4 sm:$0xff]   ;;  %v189_v51 = vld [vmem:[%s2065_s24 + $0x40] sm:$0xff]  ;;  %s1294_s8 = sshll.u32 %s177_s17, 4  ;;  %s2168_s8 = int_to_ptr.vmem [resolvable:$true] %s1294_s8 }
  0x5a   : > { %777 = vmatpush1.bf16.msra.mxu1 %v1709_v21  ;;  %v1743_v53 = vld [vmem:[#allocation5 + $0x98] ss:$12 sps:$4 sm:$0xff]   ;;  %v1744_v54 = vld [vmem:[#allocation5 + $0x140] ss:$12 sps:$4 sm:$0xff]   ;;  %v1724_v55 = vld [vmem:[#allocation5 + $0x108] ss:$12 sps:$4 sm:$0xff]   ;;  %v2089_v57 = vpack.c.bf16 %v192_v52, %v189_v51 }
  0x5b   : > { %706 = vmatpush1.bf16.msra.mxu0 %v1682_v14  ;;  %778 = vmatprep.subr.bf16.mxu1 %v1713_v22  ;;  %v1728_v56 = vld [vmem:[#allocation5 + $0xf4] ss:$12 sps:$4 sm:$0xff]   ;;  %v1730_v58 = vld [vmem:[#allocation5 + $0xf0] ss:$12 sps:$4 sm:$0xff]   ;;  %v198_v63 = vld [vmem:[%s2065_s24 + $0x88] sm:$0xff]  ;;  %s1281_s26 = scalar_lea.sflag [#allocation4], %s2061_s18 }
  0x5c   : > { %707 = vmatprep.subr.bf16.mxu0 %v1683_v16  ;;  %v1745_v59 = vld [vmem:[#allocation5 + $0x80] ss:$12 sps:$4 sm:$0xff]   ;;  %v1734_v60 = vld [vmem:[#allocation5 + $0xdc] ss:$12 sps:$4 sm:$0xff]   ;;  %v195_v62 = vld [vmem:[%s2065_s24 + $0x70] sm:$0xff]  ;;  %s1850_s27 = scalar_lea.vmem %s2168_s8, 1024 }
  0x5d   : > { %v1746_v61 = vld [vmem:[#allocation5 + $0x128] ss:$12 sps:$4 sm:$0xff]   ;;  %v1748_v2 = vld [vmem:[#allocation5 + $0x110] ss:$12 sps:$4 sm:$0xff]   ;;  %v1736_v3 = vld [vmem:[#allocation5 + $0xd8] ss:$12 sps:$4 sm:$0xff]   ;;  %v2095_v5 = vpack.c.bf16 %v198_v63, %v195_v62  ;;  %p1851_p3 = scmp.ne.s32.totalorder %s2168_s8, %s1850_s27 }
  0x5e   : > { %779 = vmatpush1.bf16.msra.mxu1 %v1715_v25  ;;  %v1747_v1 = vld [vmem:[#allocation5 + $0x68] ss:$12 sps:$4 sm:$0xff]   ;;  %v1737_v4 = vld [vmem:[#allocation5 + $0xc4] ss:$12 sps:$4 sm:$0xff]   ;;  %v1739_v6 = vld [vmem:[#allocation5 + $0xc0] ss:$12 sps:$4 sm:$0xff]  }
  0x5f   : > { %708 = vmatpush1.bf16.msra.mxu0 %v1685_v19  ;;  %780 = vmatprep.subr.bf16.mxu1 %v1719_v26  ;;  %v181_v7 = vld [vmem:[%s2065_s24] sm:$0xff]  ;;  %v184_v8 = vld [vmem:[%s2065_s24 + $0x18] sm:$0xff]  ;;  %v191_v11 = vld [vmem:[%s2065_s24 + $0x50] sm:$0xff]  ;;  %p2234_p11 = scmp.ne.s32.totalorder %s2228_s30, 0  ;;  %s1927_s13 = smov [#allocation7]  }
  0x60   : > { %709 = vmatprep.subr.bf16.mxu0 %v1686_v20  ;;  %v1749_v9 = vld [vmem:[#allocation5 + $0x50] ss:$12 sps:$4 sm:$0xff]   ;;  %v1750_v12 = vld [vmem:[#allocation5 + $0xf8] ss:$12 sps:$4 sm:$0xff]   ;;  %v205_v17 = vpack.c.bf16 %v184_v8, %v181_v7  ;;  %v1752_v18 = vld [vmem:[#allocation5 + $0xe0] ss:$12 sps:$4 sm:$0xff]  }
  0x61   : > { %v188_v10 = vld [vmem:[%s2065_s24 + $0x38] sm:$0xff]  ;;  %v201_v13 = vld [vmem:[%s2065_s24 + $0xa0] sm:$0xff]  ;;  %v194_v25 = vld [vmem:[%s2065_s24 + $0x68] sm:$0xff]  ;;  %p1852_p7 = pnand %p1851_p3, %p2234_p11  ;;  %s1854_s28 = sshll.u32 %s1927_s13, 4  ;;  %s1855_s28 = int_to_ptr.vmem [resolvable:$false] %s1854_s28 }
  0x62   : > { %781 = vmatpush1.bf16.msra.mxu1 %v1721_v29  ;;  %v204_v14 = vld [vmem:[%s2065_s24 + $0xb8] sm:$0xff]  ;;  %v209_v19 = vpack.c.bf16 %v191_v11, %v188_v10  ;;  %v1753_v22 = vld [vmem:[#allocation5 + $0x20] ss:$12 sps:$4 sm:$0xff]   ;;  %v203_v35 = vld [vmem:[%s2065_s24 + $0xb0] sm:$0xff]  ;;  %s1856_s3 = scalar_lea.vmem %s1855_s28, 2048  ;;  %p1857_p10 = scmp.lt.s32.totalorder %s2168_s8, %s1855_s28 }
  0x63   : > { %710 = vmatpush1.bf16.msra.mxu0 %v1688_v23  ;;  %782 = vmatprep.subr.bf16.mxu1 %v1725_v30  ;;  %v1751_v15 = vld [vmem:[#allocation5 + $0x38] ss:$12 sps:$4 sm:$0xff]   ;;  %v1756_v16 = vld [vmem:[#allocation5 + $0x230] ss:$12 sps:$4 sm:$0xff]   ;;  %v2105_v20 = vpack.c.bf16 %v204_v14, %v201_v13  ;;  %v1754_v23 = vld [vmem:[#allocation5 + $0xc8] ss:$12 sps:$4 sm:$0xff]   ;;  %p1853_p12 = pneg %p1852_p7  ;;  %p1858_p2 = scmp.lt.s32.totalorder %s1856_s3, %s1850_s27 }
  0x64   : > { %711 = vmatprep.subr.bf16.mxu0 %v1692_v24  ;;  %v1757_v21 = vld [vmem:[#allocation5 + $0x218] ss:$12 sps:$4 sm:$0xff]   ;;  %v190_v24 = vld [vmem:[%s2065_s24 + $0x48] sm:$0xff]  ;;  %v1760_v41 = vld [vmem:[#allocation5 + $0x1d0] ss:$12 sps:$4 sm:$0xff]  }
  0x65   : > { %v197_v26 = vld [vmem:[%s2065_s24 + $0x80] sm:$0xff]  ;;  %v196_v33 = vld [vmem:[%s2065_s24 + $0x78] sm:$0xff]  ;;  %p1859_p13 = por %p1858_p2, %p1857_p10 }
  0x66   : > { %783 = vmatpush1.bf16.msra.mxu1 %v1727_v34  ;;  %v212_v30 = vpack.c.bf16 %v197_v26, %v194_v25  ;;  %v200_v34 = vld [vmem:[%s2065_s24 + $0x98] sm:$0xff] }
  0x67   : > { %712 = vmatpush1.bf16.msra.mxu0 %v1694_v27  ;;  %784 = vmatprep.subr.bf16.mxu1 %v1731_v36  ;;  %v1758_v27 = vld [vmem:[#allocation5 + $0x200] ss:$12 sps:$4 sm:$0xff]   ;;  %v1761_v42 = vld [vmem:[#allocation5 + $0x1b8] ss:$12 sps:$4 sm:$0xff]   ;;  %p1860_p0 = pnand %p1859_p13, %p1853_p12 }
  0x68   : > { %713 = vmatprep.subr.bf16.mxu0 %v1698_v28  ;;  %v1755_v28 = vld [vmem:[#allocation5 + $0x8] ss:$12 sps:$4 sm:$0xff]  }
  0x6a   : > { %785 = vmatpush1.bf16.msra.mxu1 %v1733_v40 }
  0x6b   : > { %714 = vmatpush2.bf16.msra.mxu0 %v1700_v31  ;;  %1469 = vmatprep.subr.bf16.mxu1 %v1740_v46  ;;  %v1759_v31 = vld [vmem:[#allocation5 + $0x1e8] ss:$12 sps:$4 sm:$0xff]  }
  0x6c   : > { %715 = vmatprep.subr.bf16.mxu0 %v1704_v32  ;;  %v193_v32 = vld [vmem:[%s2065_s24 + $0x60] sm:$0xff] }
  0x6d   : > { %803 = vmatmul.mubr.bf16.vlgmr.msra.gmra.mxu1 %v2083_v45  ;;  %v211_v36 = vpack.c.bf16 %v196_v33, %v193_v32 }
  0x6e   : > { %812 = vmatprep.mubr.bf16.mxu1 %v1926_v0  ;;  %1470 = vmatpush3.bf16.msra.mxu1 %v1741_v48 }
  0x6f   : > { %716 = vmatpush2.bf16.msra.mxu0 %v1706_v38  ;;  %1471 = vmatprep.subr.bf16.mxu1 %v1742_v50  ;;  %v199_v38 = vld [vmem:[%s2065_s24 + $0x90] sm:$0xff] }
  0x70   : > { %717 = vmatprep.subr.bf16.mxu0 %v1710_v39  ;;  %v202_v39 = vld [vmem:[%s2065_s24 + $0xa8] sm:$0xff] }
  0x71   : > { %v214_v40 = vpack.c.bf16 %v202_v39, %v199_v38 }
  0x72   : > { %1472 = vmatpush3.bf16.msra.mxu1 %v1743_v53 }
  0x73   : > { %718 = vmatpush2.bf16.msra.mxu0 %v1712_v43  ;;  %1473 = vmatprep.subr.bf16.mxu1 %v1744_v54  ;;  %v1762_v43 = vld [vmem:[#allocation5 + $0x1a0] ss:$12 sps:$4 sm:$0xff]  }
  0x74   : > { %719 = vmatprep.subr.bf16.mxu0 %v1716_v44  ;;  %v1763_v44 = vld [vmem:[#allocation5 + $0x188] ss:$12 sps:$4 sm:$0xff]  }
  0x75   : > { %813 = vmatmul.mubr.bf16.gmra.mxu1 %v2089_v57 }
  0x76   : > { %822 = vmatprep.mubr.bf16.mxu1 %v1926_v0  ;;  %1474 = vmatpush3.bf16.msra.mxu1 %v1745_v59 }
  0x77   : > { %720 = vmatpush2.bf16.msra.mxu0 %v1718_v47  ;;  %1475 = vmatprep.subr.bf16.mxu1 %v1746_v61 }
  0x78   : > { %721 = vmatprep.subr.bf16.mxu0 %v1722_v49 }
  0x7a   : > { %1476 = vmatpush3.bf16.msra.mxu1 %v1747_v1 }
  0x7b   : > { %722 = vmatpush2.bf16.msra.mxu0 %v1724_v55  ;;  %1477 = vmatprep.subr.bf16.mxu1 %v1748_v2 }
  0x7c   : > { %723 = vmatprep.subr.bf16.mxu0 %v1728_v56 }
  0x7d   : > { %823 = vmatmul.mubr.bf16.gmra.mxu1 %v2095_v5 }
  0x7e   : > { %832 = vmatprep.mubr.bf16.mxu1 %v1926_v0  ;;  %1478 = vmatpush3.bf16.msra.mxu1 %v1749_v9  ;;  %v187_v0 = vld [vmem:[%s2065_s24 + $0x30] sm:$0xff] }
  0x7f   : > { %724 = vmatpush2.bf16.msra.mxu0 %v1730_v58  ;;  %1479 = vmatprep.subr.bf16.mxu1 %v1750_v12  ;;  %v208_v29 = vpack.c.bf16 %v190_v24, %v187_v0 }
  0x80   : > { %725 = vmatprep.subr.bf16.mxu0 %v1734_v60 }
  0x82   : > { %1480 = vmatpush3.bf16.msra.mxu1 %v1751_v15 }
  0x83   : > { %726 = vmatpush2.bf16.msra.mxu0 %v1736_v3  ;;  %1481 = vmatprep.subr.bf16.mxu1 %v1752_v18 }
  0x84   : > { %727 = vmatprep.subr.bf16.mxu0 %v1737_v4 }
  0x85   : > { %833 = vmatmul.mubr.bf16.gmra.mxu1 %v2105_v20 }
  0x86   : > { %1482 = vmatpush3.bf16.msra.mxu1 %v1753_v22  ;;  %875 = vmatprep.mubr.bf16.mxu1 %v2078_v37  ;;  %v215_v37 = vpack.c.bf16 %v203_v35, %v200_v34 }
  0x87   : > { %728 = vmatpush2.bf16.msra.mxu0 %v1739_v6  ;;  %1483 = vmatprep.subr.bf16.mxu1 %v1754_v23 }
  0x88   : > { %1537 = vmatprep.subr.bf16.mxu0 %v1756_v16 }
  0x8a   : > { %730 = vmatmul.mubr.bf16.vlgmr.msra.gmra.mxu0 %v205_v17  ;;  %1484 = vmatpush3.bf16.msra.mxu1 %v1755_v28 }
  0x8b   : > { %739 = vmatprep.mubr.bf16.mxu0 %v209_v19  ;;  %1538 = vmatpush3.bf16.msra.mxu0 %v1756_v16 }
  0x8c   : > { %1539 = vmatprep.subr.bf16.mxu0 %v1757_v21 }
  0x8d   : > { %876 = vmatmul.mubr.bf16.vlgmr.msra.gmra.mxu1 %v205_v17 }
  0x8e   : > { %883 = vmatprep.mubr.bf16.mxu1 %v209_v19 }
  0x8f   : > { %1540 = vmatpush3.bf16.msra.mxu0 %v1757_v21 }
  0x90   : > { %1541 = vmatprep.subr.bf16.mxu0 %v1758_v27 }
  0x92   : > { %740 = vmatmul.mubr.bf16.gmra.mxu0 %v208_v29 }
  0x93   : > { %749 = vmatprep.mubr.bf16.mxu0 %v212_v30  ;;  %1542 = vmatpush3.bf16.msra.mxu0 %v1758_v27 }
  0x94   : > { %1543 = vmatprep.subr.bf16.mxu0 %v1759_v31 }
  0x95   : > { %884 = vmatmul.mubr.bf16.gmra.mxu1 %v208_v29 }
  0x96   : > { %891 = vmatprep.mubr.bf16.mxu1 %v212_v30 }
  0x97   : > { %1544 = vmatpush3.bf16.msra.mxu0 %v1759_v31 }
  0x98   : > { %1545 = vmatprep.subr.bf16.mxu0 %v1760_v41 }
  0x9a   : > { %750 = vmatmul.mubr.bf16.gmra.mxu0 %v211_v36 }
  0x9b   : > { %759 = vmatprep.mubr.bf16.mxu0 %v215_v37  ;;  %1546 = vmatpush3.bf16.msra.mxu0 %v1760_v41 }
  0x9c   : > { %1547 = vmatprep.subr.bf16.mxu0 %v1761_v42 }
  0x9d   : > { %892 = vmatmul.mubr.bf16.gmra.mxu1 %v211_v36 }
  0x9e   : > { %899 = vmatprep.mubr.bf16.mxu1 %v215_v37 }
  0x9f   : > { %1548 = vmatpush3.bf16.msra.mxu0 %v1761_v42 }
  0xa0   : > { %1549 = vmatprep.subr.bf16.mxu0 %v1762_v43 }
  0xa2   : > { %760 = vmatmul.mubr.bf16.gmra.mxu0 %v214_v40 }
  0xa3   : > { %1553 = vmatprep.mubr.bf16.mxu0 %v2083_v45  ;;  %1550 = vmatpush3.bf16.msra.mxu0 %v1762_v43 }
  0xa4   : > { %1551 = vmatprep.subr.bf16.mxu0 %v1763_v44 }
  0xa5   : > { %900 = vmatmul.mubr.bf16.gmra.mxu1 %v214_v40 }
  0xa7   : > { %1552 = vmatpush3.bf16.msra.mxu0 %v1763_v44 }
  0xaa   : > { %1554 = vmatmul.mubr.bf16.vlgmr.msra.gmra.mxu0 %v2089_v57 }
  0xab   : > { %1557 = vmatprep.mubr.bf16.mxu0 %v2095_v5 }
  0xb2   : > { %1558 = vmatmul.mubr.bf16.gmra.mxu0 %v2105_v20 }
 0x12d   : > { %v804_v45 = vpop.f32.mrf.mxu1 }
 0x12f   : > { %v806_v46 = vpop.f32.mrf.mxu1 }
 0x131   : > { %v808_v47 = vpop.f32.mrf.mxu1 }
 0x133   : > { %v810_v48 = vpop.f32.mrf.mxu1 }
 0x135   : > { %v2123_v49 = vpop.f32.mrf.mxu1 }
 0x137   : > { %v816_v50 = vpop.f32.mrf.mxu1 }
 0x139   : > { %v818_v51 = vpop.f32.mrf.mxu1 }
 0x13b   : > { %v820_v52 = vpop.f32.mrf.mxu1 }
 0x13d   : > { %v824_v53 = vpop.f32.mrf.mxu1 }
 0x13f   : > { %v826_v54 = vpop.f32.mrf.mxu1 }
 0x141   : > { %v828_v56 = vpop.f32.mrf.mxu1 }
 0x143   : > { %v830_v57 = vpop.f32.mrf.mxu1 }
 0x145   : > { %v834_v2 = vpop.f32.mrf.mxu1 }
 0x147   : > { %v836_v5 = vpop.f32.mrf.mxu1 }
 0x149   : > { %v838_v8 = vpop.f32.mrf.mxu1 }
 0x14a   : > { %v731_v55 = vpop.f32.mrf.mxu0 }
 0x14b   : > { %v805_v60 = vadd.f32 %v804_v45, %v731_v55  ;;  %v840_v11 = vpop.f32.mrf.mxu1 }
 0x14c   : > { %v733_v58 = vpop.f32.mrf.mxu0 }
 0x14d   : > { %v2125_v13 = vpop.f32.mrf.mxu1  ;;  %v807_v33 = vadd.f32 %v806_v46, %v733_v58 }
 0x14e   : > { %v735_v59 = vpop.f32.mrf.mxu0 }
 0x14f   : > { %v809_v61 = vadd.f32 %v808_v47, %v735_v59  ;;  %v2127_v16 = vpop.f32.mrf.mxu1 }
 0x150   : > { %v737_v62 = vpop.f32.mrf.mxu0 }
 0x151   : > { %v973_v63 = vpack.c.bf16 %v809_v61, %v805_v60  ;;  %v2129_v19 = vpop.f32.mrf.mxu1  ;;  %v811_v32 = vadd.f32 %v810_v48, %v737_v62 }
 0x152   : > { %v741_v1 = vpop.f32.mrf.mxu0 }
 0x153   : > { %1569 = vmatprep.mubr.bf16.mxu1 %v973_v63  ;;  %v1489_v24 = vpop.f32.mrf.mxu1  ;;  %v977_v35 = vpack.c.bf16 %v811_v32, %v807_v33  ;;  %v815_v41 = vadd.f32 %v2123_v49, %v741_v1 }
 0x154   : > { %v743_v3 = vpop.f32.mrf.mxu0 }
 0x155   : > { %v1491_v26 = vpop.f32.mrf.mxu1  ;;  %v817_v28 = vadd.f32 %v816_v50, %v743_v3 }
 0x156   : > { %v745_v4 = vpop.f32.mrf.mxu0 }
 0x157   : > { %v1492_v29 = vpop.f32.mrf.mxu1  ;;  %v819_v38 = vadd.f32 %v818_v51, %v745_v4 }
 0x158   : > { %v747_v6 = vpop.f32.mrf.mxu0  ;;  %v1493_v62 = vadd.f32 %v1492_v29, %v1491_v26 }
 0x159   : > { %v821_v27 = vadd.f32 %v820_v52, %v747_v6  ;;  %v1494_v31 = vpop.f32.mrf.mxu1  ;;  %v974_v43 = vpack.c.bf16 %v819_v38, %v815_v41  ;;  %v1487_v6 = vadd.f32 %v2127_v16, %v2125_v13  ;;  %v1050_v16 = vlaneseq }
 0x15a   : > { %v751_v7 = vpop.f32.mrf.mxu0 }
 0x15b   : > { %v978_v30 = vpack.c.bf16 %v821_v27, %v817_v28  ;;  %v1495_v34 = vpop.f32.mrf.mxu1  ;;  %v825_v42 = vadd.f32 %v824_v53, %v751_v7  ;;  %v1490_v7 = vadd.f32 %v1489_v24, %v2129_v19  ;;  %v1051_v19 = vshrl.u32 %v1050_v16, 7 }
 0x15c   : > { %v753_v9 = vpop.f32.mrf.mxu0  ;;  %v1496_v63 = vadd.f32 %v1495_v34, %v1494_v31 }
 0x15d   : > { %v827_v23 = vadd.f32 %v826_v54, %v753_v9  ;;  %v1497_v36 = vpop.f32.mrf.mxu1  ;;  %v1069_v24 = vshra.s32 %v1051_v19, 5  ;;  %v1057_v27 = vadd.s32 48, %v1051_v19  ;;  %v1055_v29 = vadd.s32 32, %v1051_v19 }
 0x15e   : > { %v755_v10 = vpop.f32.mrf.mxu0  ;;  %v1056_v34 = vadd.s32 40, %v1051_v19  ;;  %v1058_v38 = vadd.s32 56, %v1051_v19 }
 0x15f   : > { %v1498_v37 = vpop.f32.mrf.mxu1  ;;  %v829_v39 = vadd.f32 %v828_v56, %v755_v10  ;;  %v1075_v31 = vshra.s32 %v1057_v27, 5  ;;  %v1073_v33 = vshra.s32 %v1055_v29, 5 }
 0x160   : > { %v757_v12 = vpop.f32.mrf.mxu0  ;;  %v1499_v53 = vadd.f32 %v1498_v37, %v1497_v36  ;;  %v1074_v41 = vshra.s32 %v1056_v34, 5 }
 0x161   : > { %v831_v20 = vadd.f32 %v830_v57, %v757_v12  ;;  %v1500_v40 = vpop.f32.mrf.mxu1  ;;  %v975_v44 = vpack.c.bf16 %v829_v39, %v825_v42 }
 0x162   : > { %v761_v14 = vpop.f32.mrf.mxu0 }
 0x163   : > { %v979_v25 = vpack.c.bf16 %v831_v20, %v827_v23  ;;  %v1501_v45 = vpop.f32.mrf.mxu1  ;;  %v835_v48 = vadd.f32 %v834_v2, %v761_v14  ;;  %v1053_v20 = vadd.s32 16, %v1051_v19 }
 0x164   : > { %v763_v15 = vpop.f32.mrf.mxu0  ;;  %v1502_v1 = vadd.f32 %v1501_v45, %v1500_v40 }
 0x165   : > { %v837_v21 = vadd.f32 %v836_v5, %v763_v15  ;;  %v1503_v46 = vpop.f32.mrf.mxu1 }
 0x166   : > { %v765_v17 = vpop.f32.mrf.mxu0 }
 0x167   : > { %v839_v47 = vadd.f32 %v838_v8, %v765_v17  ;;  %v1504_v52 = vpop.f32.mrf.mxu1 }
 0x168   : > { %v767_v18 = vpop.f32.mrf.mxu0  ;;  %v1505_v57 = vadd.f32 %v1504_v52, %v1503_v46 }
 0x169   : > { %v841_v22 = vadd.f32 %v840_v11, %v767_v18  ;;  %v976_v50 = vpack.c.bf16 %v839_v47, %v835_v48  ;;  %v1506_v58 = vpop.f32.mrf.mxu1  ;;  %v1076_v47 = vshra.s32 %v1058_v38, 5 }
 0x16a   : > { %v1555_v54 = vpop.f32.mrf.mxu0 }
 0x16b   : > { %v980_v0 = vpack.c.bf16 %v841_v22, %v837_v21  ;;  %v1507_v59 = vpop.f32.mrf.mxu1  ;;  %v951_v9 = vadd.f32 %v1555_v54, %v1493_v62  ;;  %v2135_v21 = vand.u32 127, %v1050_v16  ;;  %v1071_v22 = vshra.s32 %v1053_v20, 5 }
 0x16c   : > { %v942_v55 = vpop.f32.mrf.mxu0  ;;  %v1508_v60 = vadd.f32 %v1507_v59, %v1506_v58 }
 0x16d   : > { %1561 = vmatprep.subr.bf16.mxu1 %v980_v0  ;;  %v943_v15 = vadd.f32 %v1487_v6, %v942_v55  ;;  %v1077_v23 = vshra.s32 %v2135_v21, 5  ;;  %vm1063_vm0 = vcmp.le.s32.totalorder %v2135_v21, %v1053_v20  ;;  %vm1061_vm2 = vcmp.le.s32.totalorder %v2135_v21, %v1051_v19 }
 0x16e   : > { %1562 = vmatpush3.bf16.xpose.msra.mxu1 %v980_v0  ;;  %v1556_v51 = vpop.f32.mrf.mxu0  ;;  %v1054_v0 = vadd.s32 24, %v1051_v19  ;;  %vm1067_vm13 = vcmp.le.s32.totalorder %v2135_v21, %v1057_v27  ;;  %vm1065_vm15 = vcmp.le.s32.totalorder %v2135_v21, %v1055_v29 }
 0x16f   : > { %1563 = vmatprep.subr.bf16.mxu1 %v979_v25  ;;  %v954_v10 = vadd.f32 %v1556_v51, %v1496_v63  ;;  %vm1080_vm1 = vcmp.eq.s32.totalorder %v1071_v22, %v1077_v23  ;;  %vm1078_vm3 = vcmp.eq.s32.totalorder %v1069_v24, %v1077_v23  ;;  %vm1084_vm14 = vcmp.eq.s32.totalorder %v1075_v31, %v1077_v23 }
 0x170   : > { %v945_v56 = vpop.f32.mrf.mxu0  ;;  %v1072_v26 = vshra.s32 %v1054_v0, 5  ;;  %vm1088_vm4 = vmand %vm1063_vm0, %vm1080_vm1  ;;  %vm1064_vm6 = vcmp.le.s32.totalorder %v2135_v21, %v1054_v0  ;;  %vm1082_vm0 = vcmp.eq.s32.totalorder %v1073_v33, %v1077_v23 }
 0x171   : > { %v982_v17 = vpack.c.bf16 %v954_v10, %v951_v9  ;;  %v946_v18 = vadd.f32 %v1490_v7, %v945_v56  ;;  %vm1086_vm8 = vmand %vm1061_vm2, %vm1078_vm3  ;;  %vm1066_vm3 = vcmp.le.s32.totalorder %v2135_v21, %v1056_v34 }
 0x172   : > { %v1559_v49 = vpop.f32.mrf.mxu0  ;;  %vm1081_vm7 = vcmp.eq.s32.totalorder %v1072_v26, %v1077_v23  ;;  %vm1092_vm1 = vmand %vm1067_vm13, %vm1084_vm14 }
 0x173   : > { %v967_v3 = vadd.f32 %v1559_v49, %v1505_v57  ;;  %v981_v13 = vpack.c.bf16 %v946_v18, %v943_v15  ;;  %vm1089_vm11 = vmand %vm1064_vm6, %vm1081_vm7  ;;  %vm1068_vm6 = vcmp.le.s32.totalorder %v2135_v21, %v1058_v38  ;;  %vm1085_vm7 = vcmp.eq.s32.totalorder %v1076_v47, %v1077_v23 }
 0x174   : > { %v958_v61 = vpop.f32.mrf.mxu0  ;;  %vm1090_vm2 = vmand %vm1065_vm15, %vm1082_vm0 }
 0x175   : > { %v959_v2 = vadd.f32 %v1499_v53, %v958_v61 }
 0x176   : > { %1564 = vmatpush3.bf16.xpose.msra.mxu1 %v979_v25  ;;  %v1560_v4 = vpop.f32.mrf.mxu0  ;;  %v1052_v25 = vadd.s32 8, %v1051_v19 }
 0x177   : > { %1565 = vmatprep.subr.bf16.mxu1 %v978_v30  ;;  %v970_v5 = vadd.f32 %v1560_v4, %v1508_v60 }
 0x178   : > { %v961_v8 = vpop.f32.mrf.mxu0  ;;  %v1070_v28 = vshra.s32 %v1052_v25, 5  ;;  %vm1062_vm9 = vcmp.le.s32.totalorder %v2135_v21, %v1052_v25 }
 0x179   : > { %v984_v11 = vpack.c.bf16 %v970_v5, %v967_v3  ;;  %v962_v12 = vadd.f32 %v1502_v1, %v961_v8 }
 0x17a   : > { %vm1079_vm10 = vcmp.eq.s32.totalorder %v1070_v28, %v1077_v23 }
 0x17b   : > { %v983_v14 = vpack.c.bf16 %v962_v12, %v959_v2  ;;  %1577 = vmatprep.subr.bf16.mxu0 %v984_v11  ;;  %vm1087_vm12 = vmand %vm1062_vm9, %vm1079_vm10 }
 0x17c   : > { %1578 = vmatpush3.bf16.msra.mxu0 %v984_v11  ;;  %vm1093_vm9 = vmand %vm1068_vm6, %vm1085_vm7 }
 0x17d   : > { %1579 = vmatprep.subr.bf16.mxu0 %v983_v14 }
 0x17e   : > { %1566 = vmatpush3.bf16.xpose.msra.mxu1 %v978_v30 }
 0x17f   : > { %1567 = vmatprep.subr.bf16.mxu1 %v977_v35 }
 0x180   : > { %1580 = vmatpush3.bf16.msra.mxu0 %v983_v14 }
 0x181   : > { %1581 = vmatprep.subr.bf16.mxu0 %v982_v17 }
 0x184   : > { %1582 = vmatpush3.bf16.msra.mxu0 %v982_v17 }
 0x185   : > { %1583 = vmatprep.subr.bf16.mxu0 %v981_v13 }
 0x186   : > { %1568 = vmatpush3.bf16.xpose.msra.mxu1 %v977_v35 }
 0x187   : > { %1593 = vmatprep.subr.bf16.mxu1 %v984_v11 }
 0x188   : > { %1584 = vmatpush3.bf16.msra.mxu0 %v981_v13 }
 0x18d   : > { %1570 = vmatmul.mubr.bf16.vlgmr.msra.gmra.mxu1 %v974_v43 }
 0x18e   : > { %1573 = vmatprep.mubr.bf16.mxu1 %v975_v44  ;;  %1597 = vmatpush3.bf16.msra.mxu1 %v984_v11 }
 0x18f   : > { %1594 = vmatprep.subr.bf16.mxu1 %v983_v14 }
 0x192   : > { %1598 = vmatpush3.bf16.msra.mxu1 %v983_v14 }
 0x193   : > { %1595 = vmatprep.subr.bf16.mxu1 %v982_v17 }
 0x195   : > { %1574 = vmatmul.mubr.bf16.gmra.mxu1 %v976_v50 }
 0x196   : > { %1599 = vmatpush3.bf16.msra.mxu1 %v982_v17 }
 0x197   : > { %1596 = vmatprep.subr.bf16.mxu1 %v981_v13 }
 0x19a   : > { %1600 = vmatpush3.bf16.msra.mxu1 %v981_v13 }
 0x24d   : > { %v1571_v30 = vpop.f32.mrf.mxu1 }
 0x24e   : > { %v1096_v32 = vsel %vm1088_vm4, %v1571_v30, -inf  ;;  %vm1083_vm4 = vcmp.eq.s32.totalorder %v1074_v41, %v1077_v23 }
 0x24f   : > { %v1019_v35 = vpop.f32.mrf.mxu1  ;;  %v1109_v36 = vsel %vm1102_vm5, %v1096_v32, -inf }
 0x250   : > { %v1094_v37 = vsel %vm1086_vm8, %v1019_v35, -inf  ;;  %1110 = vmax.xlane.f32.xlu0 %v1109_v36  ;;  %vm1091_vm8 = vmand %vm1066_vm3, %vm1083_vm4 }
 0x251   : > { %v1572_v39 = vpop.f32.mrf.mxu1  ;;  %v1103_v43 = vsel %vm1102_vm5, %v1094_v37, -inf }
 0x252   : > { %v1097_v40 = vsel %vm1089_vm11, %v1572_v39, -inf }
 0x253   : > { %v1022_v42 = vpop.f32.mrf.mxu1  ;;  %v1112_v44 = vsel %vm1102_vm5, %v1097_v40, -inf }
 0x254   : > { %v1095_v45 = vsel %vm1087_vm12, %v1022_v42, -inf  ;;  %1104 = vmax.xlane.f32.xlu0 %v1103_v43  ;;  %1113 = vmax.xlane.f32.xlu1 %v1112_v44 }
 0x255   : > { %v1575_v46 = vpop.f32.mrf.mxu1  ;;  %v1106_v50 = vsel %vm1102_vm5, %v1095_v45, -inf }
 0x256   : > { %v1100_v52 = vsel %vm1092_vm1, %v1575_v46, -inf }
 0x257   : > { %v1035_v48 = vpop.f32.mrf.mxu1  ;;  %v1121_v56 = vsel %vm1102_vm5, %v1100_v52, -inf }
 0x258   : > { %v1098_v54 = vsel %vm1090_vm2, %v1035_v48, -inf  ;;  %1107 = vmax.xlane.f32.xlu0 %v1106_v50 }
 0x259   : > { %v1576_v55 = vpop.f32.mrf.mxu1  ;;  %v1115_v58 = vsel %vm1102_vm5, %v1098_v54, -inf }
 0x25a   : > { %1116 = vmax.xlane.f32.xlu1 %v1115_v58  ;;  %v1101_v49 = vsel %vm1093_vm9, %v1576_v55, -inf }
 0x25b   : > { %v1038_v51 = vpop.f32.mrf.mxu1  ;;  %v1124_v53 = vsel %vm1102_vm5, %v1101_v49, -inf }
 0x25c   : > { %v1099_v59 = vsel %vm1091_vm8, %v1038_v51, -inf  ;;  %1122 = vmax.xlane.f32.xlu0 %v1121_v56 }
 0x25d   : > { %v1118_v57 = vsel %vm1102_vm5, %v1099_v59, -inf }
 0x25e   : > { %1119 = vmax.xlane.f32.xlu1 %v1118_v57 }
 0x262   : > { %1125 = vmax.xlane.f32.xlu1 %v1124_v53 }
 0x2d9   : > { %v1111_v60 = vpop.xlane.xlu0 %1110 }
 0x2da   : > { %v1129_v61 = vsub.f32 %v1096_v32, %v1111_v60 }
 0x2dc   : > { %v1139_v62 = vmul.f32 1.442695, %v1129_v61 }
 0x2dd   : > { %v1105_v63 = vpop.xlane.xlu0 %1104  ;;  %v1114_v1 = vpop.xlane.xlu1 %1113 }
 0x2de   : > { %1764 = vpow2.f32 %v1139_v62  ;;  %v1127_v3 = vsub.f32 %v1094_v37, %v1105_v63  ;;  %v1130_v4 = vsub.f32 %v1097_v40, %v1114_v1 }
 0x2e0   : > { %v1135_v2 = vmul.f32 1.442695, %v1127_v3  ;;  %v1141_v5 = vmul.f32 1.442695, %v1130_v4 }
 0x2e1   : > { %v1108_v6 = vpop.xlane.xlu0 %1107 }
 0x2e2   : > { %1766 = vpow2.f32 %v1135_v2  ;;  %v1128_v7 = vsub.f32 %v1095_v45, %v1108_v6 }
 0x2e3   : > { %1768 = vpow2.f32 %v1141_v5  ;;  %v1117_v8 = vpop.xlane.xlu1 %1116 }
 0x2e4   : > { %v1137_v9 = vmul.f32 1.442695, %v1128_v7  ;;  %v1131_v10 = vsub.f32 %v1098_v54, %v1117_v8 }
 0x2e5   : > { %v1123_v11 = vpop.xlane.xlu0 %1122 }
 0x2e6   : > { %1770 = vpow2.f32 %v1137_v9  ;;  %v1143_v12 = vmul.f32 1.442695, %v1131_v10  ;;  %v1133_v14 = vsub.f32 %v1100_v52, %v1123_v11 }
 0x2e7   : > { %v1120_v15 = vpop.xlane.xlu1 %1119 }
 0x2e8   : > { %1772 = vpow2.f32 %v1143_v12  ;;  %v1147_v17 = vmul.f32 1.442695, %v1133_v14  ;;  %v1132_v18 = vsub.f32 %v1099_v59, %v1120_v15 }
 0x2ea   : > { %1774 = vpow2.f32 %v1147_v17  ;;  %v1145_v13 = vmul.f32 1.442695, %v1132_v18 }
 0x2eb   : > { %v1765_v16 = vpop.eup %1764  ;;  %v1126_v19 = vpop.xlane.xlu1 %1125 }
 0x2ec   : > { %1776 = vpow2.f32 %v1145_v13  ;;  %v1134_v20 = vsub.f32 %v1101_v49, %v1126_v19  ;;  %v1157_v21 = vsel %vm1102_vm5, %v1765_v16, 0.0 }
 0x2ed   : > { %1158 = vadd.xlane.f32.xlu0 %v1157_v21 }
 0x2ee   : > { %v1149_v22 = vmul.f32 1.442695, %v1134_v20 }
 0x2ef   : > { %v1767_v23 = vpop.eup %1766 }
 0x2f0   : > { %v1769_v0 = vpop.eup %1768  ;;  %1778 = vpow2.f32 %v1149_v22  ;;  %v1151_v24 = vsel %vm1102_vm5, %v1767_v23, 0.0 }
 0x2f1   : > { %1152 = vadd.xlane.f32.xlu0 %v1151_v24  ;;  %v1160_v25 = vsel %vm1102_vm5, %v1769_v0, 0.0 }
 0x2f2   : > { %1161 = vadd.xlane.f32.xlu1 %v1160_v25 }
 0x2f3   : > { %v1771_v26 = vpop.eup %1770 }
 0x2f4   : > { %v1154_v27 = vsel %vm1102_vm5, %v1771_v26, 0.0 }
 0x2f5   : > { %v1773_v28 = vpop.eup %1772 }
 0x2f6   : > { %1155 = vadd.xlane.f32.xlu1 %v1154_v27  ;;  %v1163_v29 = vsel %vm1102_vm5, %v1773_v28, 0.0 }
 0x2f7   : > { %v1775_v30 = vpop.eup %1774  ;;  %1164 = vadd.xlane.f32.xlu0 %v1163_v29 }
 0x2f8   : > { %v1169_v32 = vsel %vm1102_vm5, %v1775_v30, 0.0 }
 0x2f9   : > { %v1777_v31 = vpop.eup %1776 }
 0x2fa   : > { %v1166_v33 = vsel %vm1102_vm5, %v1777_v31, 0.0 }
 0x2fb   : > { %1170 = vadd.xlane.f32.xlu0 %v1169_v32  ;;  %1167 = vadd.xlane.f32.xlu1 %v1166_v33 }
 0x2fd   : > { %v1779_v34 = vpop.eup %1778 }
 0x2fe   : > { %v1172_v35 = vsel %vm1102_vm5, %v1779_v34, 0.0 }
 0x2ff   : > { %1173 = vadd.xlane.f32.xlu1 %v1172_v35 }
 0x376   : > { %v1159_v36 = vpop.xlane.xlu0 %1158 }
 0x37a   : > { %v1153_v37 = vpop.xlane.xlu0 %1152 }
 0x37b   : > { %v1162_v38 = vpop.xlane.xlu1 %1161 }
 0x37c   : > { %1780 = vrcp.f32 %v1162_v38 }
 0x37d   : > { %1782 = vrcp.f32 %v1153_v37 }
 0x37e   : > { %1784 = vrcp.f32 %v1159_v36 }
 0x37f   : > { %v1156_v39 = vpop.xlane.xlu1 %1155 }
 0x380   : > { %1786 = vrcp.f32 %v1156_v39  ;;  %v1165_v40 = vpop.xlane.xlu0 %1164 }
 0x381   : > { %1788 = vrcp.f32 %v1165_v40 }
 0x384   : > { %v1171_v41 = vpop.xlane.xlu0 %1170  ;;  %v1168_v42 = vpop.xlane.xlu1 %1167 }
 0x385   : > { %1790 = vrcp.f32 %v1168_v42 }
 0x386   : > { %1792 = vrcp.f32 %v1171_v41 }
 0x388   : > { %v1174_v43 = vpop.xlane.xlu1 %1173 }
 0x389   : > { %1794 = vrcp.f32 %v1174_v43  ;;  %v1781_v44 = vpop.eup %1780 }
 0x38a   : > { %v1783_v45 = vpop.eup %1782  ;;  %v1186_v48 = vmul.f32 %v1781_v44, %v1769_v0 }
 0x38b   : > { %v1785_v47 = vpop.eup %1784  ;;  %v1183_v50 = vmul.f32 %v1783_v45, %v1767_v23 }
 0x38c   : > { %v1185_v54 = vmul.f32 %v1785_v47, %v1765_v16 }
 0x38d   : > { %v1787_v46 = vpop.eup %1786 }
 0x38e   : > { %v1184_v52 = vmul.f32 %v1787_v46, %v1771_v26  ;;  %v1789_v58 = vpop.eup %1788  ;;  %v1192_v51 = vpack.c.bf16 %v1186_v48, %v1185_v54 }
 0x38f   : > { %v1187_v57 = vmul.f32 %v1789_v58, %v1773_v28 }
 0x390   : > { %v1191_v55 = vpack.c.bf16 %v1184_v52, %v1183_v50 }
 0x392   : > { %1585 = vmatprep.mubr.msk.bf16.mxu0 %vm1102_vm5, %v1191_v55  ;;  %v1791_v56 = vpop.eup %1790 }
 0x393   : > { %1586 = vmatmul.mubr.msk.bf16.vlgmr.msra.gmra.mxu0 %vm1102_vm5, %v1192_v51  ;;  %v1793_v59 = vpop.eup %1792  ;;  %v1188_v49 = vmul.f32 %v1791_v56, %v1777_v31 }
 0x394   : > { %v1189_v61 = vmul.f32 %v1793_v59, %v1775_v30 }
 0x395   : > { %v1193_v60 = vpack.c.bf16 %v1188_v49, %v1187_v57 }
 0x396   : > { %v1795_v53 = vpop.eup %1794 }
 0x397   : > { %v1190_v62 = vmul.f32 %v1795_v53, %v1779_v34  ;;  %1589 = vmatprep.mubr.msk.bf16.mxu1 %vm1102_vm5, %v1193_v60 }
 0x399   : > { %v1194_v63 = vpack.c.bf16 %v1190_v62, %v1189_v61 }
 0x39b   : > { %1590 = vmatmul.mubr.msk.bf16.vlgmr.msra.gmra.mxu1 %vm1102_vm5, %v1194_v63 }
 0x453   : > { %v1587_v1 = vpop.f32.mrf.mxu0 }
 0x454   : > { %1274 = vst [vmem:[%s177_s17 + $0x10] sm:$0xff] %v1587_v1 }
 0x455   : > { %v1241_v3 = vpop.f32.mrf.mxu0 }
 0x456   : > { %1272 = vst [vmem:[%s177_s17] sm:$0xff] %v1241_v3 }
 0x457   : > { %v1588_v4 = vpop.f32.mrf.mxu0 }
 0x458   : > { %1275 = vst [vmem:[%s177_s17 + $0x18] sm:$0xff] %v1588_v4 }
 0x459   : > { %v1244_v2 = vpop.f32.mrf.mxu0 }
 0x45a   : > { %1273 = vst [vmem:[%s177_s17 + $0x8] sm:$0xff] %v1244_v2 }
 0x45b   : > { %v1591_v5 = vpop.f32.mrf.mxu1 }
 0x45c   : > { %1278 = vst [vmem:[%s177_s17 + $0x30] sm:$0xff] %v1591_v5 }
 0x45d   : > { %v1257_v6 = vpop.f32.mrf.mxu1 }
 0x45e   : > { %1276 = vst [vmem:[%s177_s17 + $0x20] sm:$0xff] %v1257_v6 }
 0x45f   : > { %v1592_v7 = vpop.f32.mrf.mxu1 }
 0x460   : > { %1279 = vst [vmem:[%s177_s17 + $0x38] sm:$0xff] %v1592_v7 }
 0x461   : > { %v1260_v8 = vpop.f32.mrf.mxu1 }
 0x462   : > { %1277 = vst [vmem:[%s177_s17 + $0x28] sm:$0xff] %v1260_v8 }
 0x463   : > { %1863 = shalt.err (!%p1860_p0)
}
 0x464   : > { %s1864_s4 = scalar_lea.hbm %s2173_s25, 1024  ;;  %s1868_s7 = scalar_lea.hbm %s2218_s2, 2048 }
 0x465   : > { %p1865_p5 = scmp.ne.s32.totalorder %s2173_s25, %s1864_s4  ;;  %p1869_p4 = scmp.lt.s32.totalorder %s2173_s25, %s2218_s2 }
 0x466   : > { %p1870_p6 = scmp.lt.s32.totalorder %s1868_s7, %s1864_s4 }
 0x467   : > { %p1866_p9 = pnand %p1865_p5, %p2234_p11 }
 0x468   : > { %p1871_p8 = por %p1870_p6, %p1869_p4 }
 0x469   : > { %p1867_p1 = pneg %p1866_p9 }
 0x46b   : > { %p1872_p3 = pnand %p1871_p8, %p1867_p1 }
 0x46d   : > { %1875 = shalt.err (!%p1872_p3)
}
 0x46e   : > { %s1928_s24 = smov 128   ;;  %s1929_s15 = smov 8  }
 0x46f   : > { %1610 = dma.vmem_to_hbm [thread:$0]  (%p2234_p11), %s2168_s8, 1024, %s2173_s25, %s1281_s26, %s1928_s24, %s1928_s24, %s1929_s15  }
 0x470 PF: > { %s1309_s17 = sand.u32 1, %s1906_s9   ;;  %p2235_p7 = scmp.ne.s32.totalorder %s2224_s16, 0 }
 0x471   : > { %p2236_p12 = scmp.ge.s32.totalorder %s1918_s12, 2  ;;  %s1310_s14 = scalar_lea.sflag [#allocation4], %s1309_s17 }
 0x473   : > { %p1621_p10 = pnand %p2236_p12, %p2235_p7 }
 0x475   : > { %p1622_p2 = pneg %p1621_p10 }
 0x477   : > { %1901 = dma.done.wait (%p1622_p2), %s1310_s14, 1024  }
 0x478   : > { %1903 = vsyncadd (%p1622_p2), %s1310_s14, 4294966272  ;;  %p16_p13 = scmp.ge.s32.totalorder %s1999_s21, 4   ;;  %s2237_s9 = smov %s1910_s10 }
 0x479   : > { %s2238_s10 = smov %s1914_s11  ;;  %s2239_s11 = smov %s2016_s29 }
 0x47a   : > { %s2240_s12 = smov %s1999_s21  ;;  %18 = sbr.rel (!%p16_p13) target bundleno = 6 (0x6), region = 77 }
 0x47f   :  { %1315 = vsyncpa [#allocation3], 1 }
 0x480   :  { %1317 = vsyncpa [#allocation3 + $0x1], 1 }
 0x481   :  { %1318 = vsyncpa [#allocation6], 1 }
 0x482   :  { %1319 = vsyncpa [#allocation4], 1 }
 0x483   :  { %1321 = vsyncpa [#allocation4 + $0x1], 1 }

</bundles_post_ra>
